<compile_context>
chip_gen: v7x
topology: tpu7x:2x2x1
jax: 0.10.0
libtpu: 0.0.40
codegen_flags: <defaults>
</compile_context>

<pallas_src>
import jax
import jax.numpy as jnp
from jax import lax
from jax.experimental import pallas as pl
from jax.experimental.pallas import tpu as pltpu


def _round_up(x: int, m: int) -> int:
    return (x + m - 1) // m * m


def _embed_add_kernel(ids_ref, w_hbm, ptab_ref, pid_ref, o_ref, sem):
    """One token tile.

    ids_ref : SMEM (n_tok_pad,) int32 — flattened word ids (scalar prefetch)
    w_hbm   : HBM  (V, H)             — word embedding table (pl.ANY)
    ptab_ref: VMEM (P, H)             — full position table, resident
    pid_ref : VMEM (T, 1) int32       — this tile's position ids
    o_ref   : VMEM (T, H)             — output block (also the DMA gather dst)
    sem     : scalar DMA semaphore (byte-counted)
    """
    T, H = o_ref.shape
    P = ptab_ref.shape[0]
    t0 = pl.multiple_of(pl.program_id(0) * T, T)

    # 1) Issue T row-gather DMAs for the word embeddings, directly into the
    #    output block.  Partially unrolled (U rows per scf iteration) so the
    #    scalar address math co-issues with the descriptor pushes.
    U = 4

    @pl.loop(0, T, step=U)
    def _issue(i):
        base = pl.multiple_of(i, U)
        for u in range(U):
            row = base + u
            wid = ids_ref[t0 + row]
            pltpu.make_async_copy(
                w_hbm.at[pl.ds(wid, 1)],      # (1, H) table row in HBM
                o_ref.at[pl.ds(row, 1)],      # (1, H) row of the output block
                sem,
            ).start()

    # 2) While the gathers are in flight, build this tile's position rows from
    #    the VMEM-resident table: exact one-hot selection on the idle MXU.
    pids = pid_ref[...]                                        # (T, 1) int32
    iota = lax.broadcasted_iota(jnp.int32, (T, P), 1)          # (T, P)
    onehot = (pids == iota).astype(ptab_ref.dtype)             # (T, P) 0/1
    pos_rows = jnp.dot(onehot, ptab_ref[...],
                       preferred_element_type=jnp.float32,
                       precision=lax.Precision.HIGHEST)        # (T, H) f32

    # 3) One bulk wait: the DMA semaphore counts bytes, and the T started row
    #    copies sum to exactly the byte size of the full (T, H) block below.
    pltpu.make_async_copy(o_ref, o_ref, sem).wait()

    # 4) Single vectorized add + one dense (T, H) store.
    o_ref[...] = o_ref[...] + pos_rows.astype(o_ref.dtype)


def splinter_embeddings(input_ids, position_ids, word_embeddings,
                        position_embeddings, *, tile=512):
    """input_ids, position_ids: (B, S) int; tables: (V, H), (P, H)."""
    B, S = input_ids.shape
    V, H = word_embeddings.shape
    P, _ = position_embeddings.shape
    dtype = word_embeddings.dtype

    n_tok = B * S
    # Token tile: multiple of 8 (sublane-dense), capped at `tile`.
    T = min(_round_up(tile, 8), _round_up(n_tok, 8))
    n_tok_pad = _round_up(n_tok, T)
    n_tiles = n_tok_pad // T
    pad = n_tok_pad - n_tok

    flat_ids = jnp.pad(input_ids.reshape(-1).astype(jnp.int32), (0, pad))
    flat_pos = jnp.pad(position_ids.reshape(-1).astype(jnp.int32), (0, pad))
    pos_col = flat_pos.reshape(n_tok_pad, 1)    # (n_tok_pad, 1) for (T, 1) blocks

    grid_spec = pltpu.PrefetchScalarGridSpec(
        num_scalar_prefetch=1,                              # word ids -> SMEM
        grid=(n_tiles,),
        in_specs=[
            pl.BlockSpec(memory_space=pl.ANY),              # word table stays in HBM
            pl.BlockSpec((P, H), lambda i, ids: (0, 0)),    # position table resident in VMEM
            pl.BlockSpec((T, 1), lambda i, ids: (i, 0)),    # this tile's position ids
        ],
        out_specs=pl.BlockSpec((T, H), lambda i, ids: (i, 0)),
        scratch_shapes=[pltpu.SemaphoreType.DMA(())],       # one byte-counted DMA sem
    )

    out_flat = pl.pallas_call(
        _embed_add_kernel,
        out_shape=jax.ShapeDtypeStruct((n_tok_pad, H), dtype),
        grid_spec=grid_spec,
        compiler_params=pltpu.CompilerParams(
            dimension_semantics=("parallel",),   # tiles independent -> megacore on v7x
            vmem_limit_bytes=32 * 1024 * 1024,   # safe on v5e/v6e/v7x; room for larger T
        ),
    )(flat_ids, word_embeddings, position_embeddings, pos_col)

    return out_flat[:n_tok].reshape(B, S, H)


if __name__ == "__main__":
    # Small shapes consistent with the module.
    vocab_size = 64
    hidden_size = 32
    max_position_embeddings = 16
    batch, seq = 2, 8

    key = jax.random.PRNGKey(0)
    k_w, k_p, k_ids = jax.random.split(key, 3)

    # Word table: full-precision f32 (exercises the bit-exact DMA gather path).
    word_emb = jax.random.normal(k_w, (vocab_size, hidden_size), dtype=jnp.float32)
    # Position table: values chosen bf16-representable so the one-hot MXU
    # selection is exactly checkable regardless of f32-emulation details.
    pos_emb = (jax.random.normal(k_p, (max_position_embeddings, hidden_size),
                                 dtype=jnp.float32)
               .astype(jnp.bfloat16).astype(jnp.float32))

    input_ids = jax.random.randint(k_ids, (batch, seq), 0, vocab_size,
                                   dtype=jnp.int32)
    position_ids = jnp.broadcast_to(jnp.arange(seq, dtype=jnp.int32)[None, :],
                                    (batch, seq))

    out = splinter_embeddings(input_ids, position_ids, word_emb, pos_emb)
    out = jax.block_until_ready(out)

    # Pure-JAX reference of the forward semantics.
    ref = (jnp.take(word_emb, input_ids, axis=0)
           + jnp.take(pos_emb, position_ids, axis=0))
    assert out.shape == (batch, seq, hidden_size)
    assert jnp.allclose(out, ref, atol=1e-6), "mismatch vs reference"

    print("KERNEL_OK")
</pallas_src>

<mosaic_0001>
module attributes {stable_mosaic.version = 11 : i64} {
  func.func @_embed_add_kernel(%arg0: i32, %arg1: memref<16xi32, #tpu.memory_space<smem>>, %arg2: memref<64x32xf32, #tpu.memory_space<any>>, %arg3: memref<16x32xf32, #tpu.memory_space<vmem>>, %arg4: memref<16x1xi32, #tpu.memory_space<vmem>>, %arg5: memref<16x32xf32, #tpu.memory_space<vmem>>, %arg6: memref<!tpu.dma_semaphore, #tpu.memory_space<semaphore_mem>>) attributes {dimension_semantics = [#tpu.dimension_semantics<parallel>], iteration_bounds = array<i64: 1>, scalar_prefetch = 1 : i64, scratch_operands = 1 : i64, tpu.core_type = #tpu.core_type<tc>, window_params = [{}, {pipeline_mode = #tpu.pipeline_mode<synchronous>, transform_indices = @transform_1, window_bounds = array<i64: 16, 32>}, {transform_indices = @transform_2, window_bounds = array<i64: 16, 1>}, {transform_indices = @transform_3, window_bounds = array<i64: 16, 32>}]} {
    %c16_i32 = arith.constant 16 : i32
    %0 = arith.muli %arg0, %c16_i32 : i32
    %1 = tpu.assume_multiple %0, 16 : i32
    %c0_i32 = arith.constant 0 : i32
    %c4_i32 = arith.constant 4 : i32
    %2 = arith.addi %c0_i32, %c4_i32 : i32
    %c1_i32 = arith.constant 1 : i32
    scf.for %arg7 = %c0_i32 to %2 step %c1_i32  : i32 {
      %c4_i32_8 = arith.constant 4 : i32
      %14 = arith.muli %arg7, %c4_i32_8 : i32
      %c0_i32_9 = arith.constant 0 : i32
      %15 = arith.addi %c0_i32_9, %14 : i32
      %16 = tpu.assume_multiple %15, 4 : i32
      %c0_i32_10 = arith.constant 0 : i32
      %17 = arith.addi %16, %c0_i32_10 : i32
      %18 = arith.addi %1, %17 : i32
      %19 = arith.index_cast %18 : i32 to index
      %20 = memref.load %arg1[%19] : memref<16xi32, #tpu.memory_space<smem>>
      %c0_i32_11 = arith.constant 0 : i32
      %21 = tpu.memref_slice %arg2[%20, %c0_i32_11] : memref<64x32xf32, #tpu.memory_space<any>> -> memref<1x32xf32, #tpu.memory_space<any>>
      %c0_i32_12 = arith.constant 0 : i32
      %22 = tpu.memref_slice %arg5[%17, %c0_i32_12] : memref<16x32xf32, #tpu.memory_space<vmem>> -> memref<1x32xf32, #tpu.memory_space<vmem>>
      tpu.enqueue_dma source(%21 : memref<1x32xf32, #tpu.memory_space<any>>) target(%22 : memref<1x32xf32, #tpu.memory_space<vmem>>) target_semaphore(%arg6 : memref<!tpu.dma_semaphore, #tpu.memory_space<semaphore_mem>>)
      %c1_i32_13 = arith.constant 1 : i32
      %23 = arith.addi %16, %c1_i32_13 : i32
      %24 = arith.addi %1, %23 : i32
      %25 = arith.index_cast %24 : i32 to index
      %26 = memref.load %arg1[%25] : memref<16xi32, #tpu.memory_space<smem>>
      %c0_i32_14 = arith.constant 0 : i32
      %27 = tpu.memref_slice %arg2[%26, %c0_i32_14] : memref<64x32xf32, #tpu.memory_space<any>> -> memref<1x32xf32, #tpu.memory_space<any>>
      %c0_i32_15 = arith.constant 0 : i32
      %28 = tpu.memref_slice %arg5[%23, %c0_i32_15] : memref<16x32xf32, #tpu.memory_space<vmem>> -> memref<1x32xf32, #tpu.memory_space<vmem>>
      tpu.enqueue_dma source(%27 : memref<1x32xf32, #tpu.memory_space<any>>) target(%28 : memref<1x32xf32, #tpu.memory_space<vmem>>) target_semaphore(%arg6 : memref<!tpu.dma_semaphore, #tpu.memory_space<semaphore_mem>>)
      %c2_i32 = arith.constant 2 : i32
      %29 = arith.addi %16, %c2_i32 : i32
      %30 = arith.addi %1, %29 : i32
      %31 = arith.index_cast %30 : i32 to index
      %32 = memref.load %arg1[%31] : memref<16xi32, #tpu.memory_space<smem>>
      %c0_i32_16 = arith.constant 0 : i32
      %33 = tpu.memref_slice %arg2[%32, %c0_i32_16] : memref<64x32xf32, #tpu.memory_space<any>> -> memref<1x32xf32, #tpu.memory_space<any>>
      %c0_i32_17 = arith.constant 0 : i32
      %34 = tpu.memref_slice %arg5[%29, %c0_i32_17] : memref<16x32xf32, #tpu.memory_space<vmem>> -> memref<1x32xf32, #tpu.memory_space<vmem>>
      tpu.enqueue_dma source(%33 : memref<1x32xf32, #tpu.memory_space<any>>) target(%34 : memref<1x32xf32, #tpu.memory_space<vmem>>) target_semaphore(%arg6 : memref<!tpu.dma_semaphore, #tpu.memory_space<semaphore_mem>>)
      %c3_i32 = arith.constant 3 : i32
      %35 = arith.addi %16, %c3_i32 : i32
      %36 = arith.addi %1, %35 : i32
      %37 = arith.index_cast %36 : i32 to index
      %38 = memref.load %arg1[%37] : memref<16xi32, #tpu.memory_space<smem>>
      %c0_i32_18 = arith.constant 0 : i32
      %39 = tpu.memref_slice %arg2[%38, %c0_i32_18] : memref<64x32xf32, #tpu.memory_space<any>> -> memref<1x32xf32, #tpu.memory_space<any>>
      %c0_i32_19 = arith.constant 0 : i32
      %40 = tpu.memref_slice %arg5[%35, %c0_i32_19] : memref<16x32xf32, #tpu.memory_space<vmem>> -> memref<1x32xf32, #tpu.memory_space<vmem>>
      tpu.enqueue_dma source(%39 : memref<1x32xf32, #tpu.memory_space<any>>) target(%40 : memref<1x32xf32, #tpu.memory_space<vmem>>) target_semaphore(%arg6 : memref<!tpu.dma_semaphore, #tpu.memory_space<semaphore_mem>>)
    }
    %c4_i32_0 = arith.constant 4 : i32
    %c0 = arith.constant 0 : index
    %c0_1 = arith.constant 0 : index
    %3 = vector.load %arg4[%c0, %c0_1] : memref<16x1xi32, #tpu.memory_space<vmem>>, vector<16x1xi32>
    %4 = tpu.iota {dimensions = array<i32: 1>} : vector<16x16xi32>
    %5 = vector.broadcast %3 : vector<16x1xi32> to vector<16x16xi32>
    %6 = arith.cmpi eq, %5, %4 : vector<16x16xi32>
    %7 = arith.extui %6 : vector<16x16xi1> to vector<16x16xi32>
    %8 = arith.sitofp %7 : vector<16x16xi32> to vector<16x16xf32>
    %c0_2 = arith.constant 0 : index
    %c0_3 = arith.constant 0 : index
    %9 = vector.load %arg3[%c0_2, %c0_3] : memref<16x32xf32, #tpu.memory_space<vmem>>, vector<16x32xf32>
    %cst = arith.constant dense<0.000000e+00> : vector<16x32xf32>
    %10 = tpu.matmul %8, %9, %cst {dimension_numbers = #tpu.dot_dimension_numbers<[1], [0], [0], [1], [0, 0, 1, 1], [], []>, precision = #tpu.contract_precision<fp32>} : vector<16x16xf32>, vector<16x32xf32>, vector<16x32xf32> -> vector<16x32xf32>
    tpu.wait_dma2 semaphore(%arg6 : memref<!tpu.dma_semaphore, #tpu.memory_space<semaphore_mem>>) src(%arg5 : memref<16x32xf32, #tpu.memory_space<vmem>>) dst(%arg5 : memref<16x32xf32, #tpu.memory_space<vmem>>)
    %c0_4 = arith.constant 0 : index
    %c0_5 = arith.constant 0 : index
    %11 = vector.load %arg5[%c0_4, %c0_5] : memref<16x32xf32, #tpu.memory_space<vmem>>, vector<16x32xf32>
    %12 = arith.addf %11, %10 : vector<16x32xf32>
    %c0_6 = arith.constant 0 : index
    %c0_7 = arith.constant 0 : index
    %13 = vector.load %arg5[%c0_6, %c0_7] : memref<16x32xf32, #tpu.memory_space<vmem>>, vector<16x32xf32>
    tpu.vector_store %arg5[%c0_6, %c0_7], %12 {strides = array<i32>} : memref<16x32xf32, #tpu.memory_space<vmem>>, vector<16x32xf32>,
    return
  }
  func.func @transform_1(%arg0: i32, %arg1: memref<16xi32, #tpu.memory_space<smem>>) -> (i32, i32) {
    %c0_i32 = arith.constant 0 : i32
    %c0_i32_0 = arith.constant 0 : i32
    %c0_i32_1 = arith.constant 0 : i32
    return %c0_i32, %c0_i32_0 : i32, i32
  }
  func.func @transform_2(%arg0: i32, %arg1: memref<16xi32, #tpu.memory_space<smem>>) -> (i32, i32) {
    %c0_i32 = arith.constant 0 : i32
    %c0_i32_0 = arith.constant 0 : i32
    return %arg0, %c0_i32 : i32, i32
  }
  func.func @transform_3(%arg0: i32, %arg1: memref<16xi32, #tpu.memory_space<smem>>) -> (i32, i32) {
    %c0_i32 = arith.constant 0 : i32
    %c0_i32_0 = arith.constant 0 : i32
    return %arg0, %c0_i32 : i32, i32
  }
}

</mosaic_0001>

<bundles_post_ra>
// kernel: tpu_custom_call.1
= control target key start
LH: loop header
LB: loop body
LE: loop exit
PB: predicated region body
PF: predicated region fallthrough
CT: control target
= control target key end

     0   :  { %s1110_s0 = inlined_call_operand.vmem [shape: s32[16], index: 0, kind: input, shape index: {}]   ;;  %s1111_s1 = inlined_call_operand.vmem [shape: f32[64,32], index: 1, kind: input, shape index: {}]   ;;  %s1112_s2 = inlined_call_operand.vmem [shape: f32[16,32], index: 2, kind: input, shape index: {}]   ;;  %s1113_s3 = inlined_call_operand.vmem [shape: s32[16,1], index: 3, kind: input, shape index: {}]   ;;  %s1114_s4 = inlined_call_operand.hbm [shape: f32[16,32], index: 4, kind: output, shape index: {}]  }
   0x1   :  { %s9_s17 = sshll.u32 %s1110_s0, 4  ;;  %s10_s17 = int_to_ptr.vmem [resolvable:$true] %s9_s17 }
   0x2   :  { %s979_s18 = scalar_lea.vmem %s10_s17, 16  ;;  %p984_p1 = scmp.lt.s32.totalorder %s10_s17, %s10_s17 }
   0x3   :  { %p980_p0 = scmp.ne.s32.totalorder %s10_s17, %s979_s18  ;;  %p985_p2 = scmp.lt.s32.totalorder %s979_s18, %s979_s18 }
   0x5   :  { %p986_p3 = por %p985_p2, %p984_p1 }
   0x7   :  { %p987_p4 = pnand %p986_p3, %p980_p0 }
   0x9   :  { %990 = shalt.err (!%p987_p4)  }
   0xa   :  { %s1027_s19 = smov [#allocation4]  }
   0xb   :  { %12 = dma.vmem_to_smem %s10_s17, 16, %s1027_s19, [#allocation3] }
   0xc   :  { %1017 = dma.done.wait [#allocation3], 16 }
   0xd   :  { %1018 = vsyncadd [#allocation3], 4294967280 }
   0xe   :  { %14 = sfence }
   0xf   :  { %15 = vsyncpa [#allocation6], 0  ;;  %s1061_s20 = smov 0  }
  0x10 LB: > { %s845_s0 = sshll.u32 %s1025_s20, 2  ;;  %s1025_s20 = sphi %s1061_s20, %s26_s20  }
  0x11   : > { %s29_s21 = sld [smem:[#allocation4 + %s845_s0]]  ;;  %s31_s25 = scalar_lea.vmem [#allocation5], %s845_s0 }
  0x17   : > { %s30_s24 = scalar_lea.vmem %s1111_s1, %s29_s21 }
  0x18   : > { %v49_v0 = vld [vmem:[%s30_s24] sm:$0x1] }
  0x19   : > { %50 = vst [vmem:[%s31_s25] sm:$0x1] %v49_v0 }
  0x1a   : > { %75 = vsyncadd [#allocation2], 16  ;;  %s76_s26 = sadd.s32 1, %s845_s0 }
  0x1b   : > { %s78_s27 = sld [smem:[#allocation4 + %s76_s26]] }
  0x21   : > { %s79_s30 = scalar_lea.vmem %s1111_s1, %s78_s27 }
  0x22   : > { %v98_v1 = vld [vmem:[%s79_s30] sm:$0x1] }
  0x23   : > { %848 = vst [vmem:[%s31_s25 + $0x1] sm:$0x1] %v98_v1 }
  0x24   : > { %124 = vsyncadd [#allocation2], 16  ;;  %s125_s5 = sadd.s32 2, %s845_s0 }
  0x25   : > { %s127_s6 = sld [smem:[#allocation4 + %s125_s5]] }
  0x2b   : > { %s128_s9 = scalar_lea.vmem %s1111_s1, %s127_s6 }
  0x2c   : > { %v147_v2 = vld [vmem:[%s128_s9] sm:$0x1] }
  0x2d   : > { %851 = vst [vmem:[%s31_s25 + $0x2] sm:$0x1] %v147_v2 }
  0x2e   : > { %173 = vsyncadd [#allocation2], 16  ;;  %s174_s10 = sadd.s32 3, %s845_s0 }
  0x2f   : > { %s176_s11 = sld [smem:[#allocation4 + %s174_s10]] }
  0x35   : > { %s177_s14 = scalar_lea.vmem %s1111_s1, %s176_s11 }
  0x36   : > { %v196_v3 = vld [vmem:[%s177_s14] sm:$0x1] }
  0x37   : > { %854 = vst [vmem:[%s31_s25 + $0x3] sm:$0x1] %v196_v3 }
  0x38   : > { %222 = vsyncadd [#allocation2], 16  ;;  %s26_s20 = sadd.s32 1, %s1025_s20  }
  0x39   : > { %p23_p5 = scmp.ge.s32.totalorder %s26_s20, 4  }
  0x3a   :  { %v223_v4 = vld [vmem:[%s1113_s3] sm:$0xff] (%p23_p5)  ;;  %v1028_v5 = vmov (%p23_p5), 0   ;;  %v224_v6 = vld [vmem:[%s1113_s3 + $0x8] sm:$0xff] (%p23_p5)  ;;  %v225_v23 = vlaneseq (%p23_p5)  ;;  %vm241_vm0 = vcmask (%p23_p5), 130048   ;;  %v1029_v26 = vmov (%p23_p5), 0.0  }
  0x3b   :  { %25 = sbr.rel (!%p23_p5) target bundleno = 16 (0x10), region = 203  ;;  %978 = vset.pattern.permute.xlu0 (%p23_p5), %v1028_v5  ;;  %v239_v7 = vld [vmem:[%s1112_s2] sm:$0xff] (%p23_p5)  ;;  %v240_v8 = vld [vmem:[%s1112_s2 + $0x8] sm:$0xff] (%p23_p5) }
  0x3c   :  { %228 = vperm.xlu0 (%p23_p5), %978, %v223_v4   ;;  %v249_v9 = vand.u32 (%p23_p5), 4294901760, %v239_v7  ;;  %v252_v10 = vand.u32 (%p23_p5), 4294901760, %v240_v8  ;;  %v226_v24 = vand.u32 (%p23_p5), 127, %v225_v23 }
  0x3e   :  { %v930_v11 = vpack.c.bf16 (%p23_p5), %v252_v10, %v249_v9  ;;  %v337_v12 = vsub.f32 (%p23_p5), %v239_v7, %v249_v9  ;;  %v344_v13 = vsub.f32 (%p23_p5), %v240_v8, %v252_v10 }
  0x40   :  { %231 = vperm.xlu0 (%p23_p5), %978, %v224_v6   ;;  %943 = vmatprep.subr.bf16.mxu0 (%p23_p5), %v930_v11  ;;  %v338_v14 = vand.u32 (%p23_p5), 4294901760, %v337_v12  ;;  %v345_v15 = vand.u32 (%p23_p5), 4294901760, %v344_v13  ;;  %v938_v22 = vpack.c.bf16 (%p23_p5), %v344_v13, %v337_v12 }
  0x41   :  { %931 = vmatprep.subr.bf16.mxu1 (%p23_p5), %v930_v11  ;;  %945 = vmatpush3.bf16.msra.mxu0 (%p23_p5), %v930_v11 }
  0x42   :  { %933 = vmatpush3.bf16.msra.mxu1 %v930_v11  ;;  %v339_v16 = vsub.f32 %v337_v12, %v338_v14  ;;  %v346_v17 = vsub.f32 %v344_v13, %v345_v15  ;;  %v946_v18 = vpack.c.bf16 %v345_v15, %v338_v14 }
  0x44   :  { %v340_v19 = vand.u32 4294901760, %v339_v16  ;;  %v347_v20 = vand.u32 4294901760, %v346_v17  ;;  %947 = vmatprep.subr.bf16.mxu0 %v946_v18 }
  0x46   :  { %v934_v21 = vpack.c.bf16 %v347_v20, %v340_v19 }
  0x48   :  { %935 = vmatprep.subr.bf16.mxu1 %v934_v21 }
  0xbb   :  { %v229_v25 = vpop.permute.xlu0 %228 }
  0xbc   :  { %vm233_vm1 = vcmp.eq.s32.totalorder %v229_v25, %v226_v24 }
  0xbd   :  { %v855_v27 = vsel %vm233_vm1, 1.0, %v1029_v26 }
  0xbe   :  { %v243_v28 = vsel %vm241_vm0, %v855_v27, 0 }
  0xbf   :  { %v316_v29 = vsub.f32 %v243_v28, %v243_v28  ;;  %v232_v30 = vpop.permute.xlu0 %231 }
  0xc0   :  { %vm234_vm2 = vcmp.eq.s32.totalorder %v232_v30, %v226_v24 }
  0xc1   :  { %v856_v31 = vsel %vm234_vm2, 1.0, %v1029_v26  ;;  %v317_v32 = vand.u32 4294901760, %v316_v29 }
  0xc2   :  { %v246_v33 = vsel %vm241_vm0, %v856_v31, 0 }
  0xc3   :  { %v326_v34 = vsub.f32 %v246_v33, %v246_v33  ;;  %913 = vmatprep.mubr.f32.mxu0 %v317_v32  ;;  %v318_v35 = vsub.f32 %v316_v29, %v317_v32 }
  0xc5   :  { %v319_v36 = vand.u32 4294901760, %v318_v35  ;;  %v327_v37 = vand.u32 4294901760, %v326_v34 }
  0xc7   :  { %892 = vmatprep.mubr.f32.mxu1 %v319_v36  ;;  %914 = vmatmul.mubr.f32.vlgmr.msra.gmra.mrb[0].mxu0 %v327_v37  ;;  %v328_v38 = vsub.f32 %v326_v34, %v327_v37 }
  0xc8   :  { %920 = vmatprep.mubr.msk.f32.mxu0 %vm241_vm0, %v855_v27  ;;  %949 = vmatpush3.bf16.msra.mxu0 %v946_v18 }
  0xc9   :  { %v329_v39 = vand.u32 4294901760, %v328_v38  ;;  %951 = vmatprep.subr.bf16.mxu0 %v930_v11 }
  0xcb   :  { %893 = vmatmul.mubr.f32.vlgmr.msra.gmra.mrb[0].mxu1 %v329_v39 }
  0xcc   :  { %937 = vmatpush3.bf16.msra.mxu1 %v934_v21  ;;  %899 = vmatprep.mubr.msk.f32.mxu1 %vm241_vm0, %v855_v27 }
  0xcd   :  { %939 = vmatprep.subr.bf16.mxu1 %v938_v22 }
  0xcf   :  { %921 = vmatmul.mubr.msk.f32.vlgmr.msra.gmra.mrb[0].mxu0 %vm241_vm0, %v856_v31 }
  0xd0   :  { %927 = vmatprep.mubr.msk.f32.mxu0 %vm241_vm0, %v855_v27  ;;  %953 = vmatpush3.bf16.msra.mxu0 %v930_v11 }
  0xd3   :  { %900 = vmatmul.mubr.msk.f32.vlgmr.msra.gmra.mrb[0].mxu1 %vm241_vm0, %v856_v31 }
  0xd4   :  { %941 = vmatpush3.bf16.msra.mxu1 %v938_v22  ;;  %906 = vmatprep.mubr.f32.mxu1 %v316_v29 }
  0xd7   :  { %928 = vmatmul.mubr.msk.f32.vlgmr.msra.gmra.mrb[0].mxu0 %vm241_vm0, %v856_v31 }
  0xdb   :  { %907 = vmatmul.mubr.f32.vlgmr.msra.gmra.mrb[0].mxu1 %v326_v34 }
 0x1aa   :  { %v929_v40 = vpop.f32.mrb[0].mxu0 }
 0x1ab   :  { %v740_v41 = vpop.f32.mrb[1].mxu0 }
 0x1ae   :  { %v908_v42 = vpop.f32.mrb[0].mxu1 }
 0x1af   :  { %v954_v43 = vadd.f32 %v929_v40, %v908_v42  ;;  %v494_v44 = vpop.f32.mrb[1].mxu1 }
 0x1b0   :  { %v955_v45 = vadd.f32 %v740_v41, %v494_v44 }
 0x1b1   :  { %1019 = dma.done.wait [#allocation2], 256 }
 0x1b2   :  { %1020 = vsyncadd [#allocation2], 4294967040  ;;  %s1030_s1 = smov [#allocation5]   ;;  %v753_v46 = vld [vmem:[#allocation5] sm:$0xff]  ;;  %vm757_vm3 = vcmask 261120   ;;  %v754_v47 = vld [vmem:[#allocation5 + $0x8] sm:$0xff] }
 0x1b3   :  { %s765_s2 = sshll.u32 %s1030_s1, 4  ;;  %v755_v48 = vadd.f32 %v955_v45, %v753_v46  ;;  %v756_v49 = vadd.f32 %v954_v43, %v754_v47  ;;  %s766_s2 = int_to_ptr.vmem [resolvable:$true] %s765_s2 }
 0x1b4   :  { %s991_s3 = scalar_lea.vmem %s766_s2, 256  ;;  %p996_p7 = scmp.lt.s32.totalorder %s766_s2, %s766_s2 }
 0x1b5   :  { %758 = vst.msk [vmem:[#allocation5] sm:$0xff] %vm757_vm3, %v755_v48  ;;  %759 = vst.msk [vmem:[#allocation5 + $0x8] sm:$0xff] %vm757_vm3, %v756_v49  ;;  %p992_p6 = scmp.ne.s32.totalorder %s766_s2, %s991_s3  ;;  %p997_p8 = scmp.lt.s32.totalorder %s991_s3, %s991_s3 }
 0x1b7   :  { %p998_p9 = por %p997_p8, %p996_p7 }
 0x1b9   :  { %p999_p10 = pnand %p998_p9, %p992_p6 }
 0x1bb   :  { %1002 = shalt.err (!%p999_p10)
}
 0x1bc   :  { %s1003_s24 = scalar_lea.hbm %s1114_s4, 256 }
 0x1bd   :  { %p1004_p11 = scmp.ne.s32.totalorder %s1114_s4, %s1003_s24  ;;  %p1007_p12 = scmp.lt.u32.totalorder %s1003_s24, %s1114_s4 }
 0x1bf   :  { %p1009_p13 = pnand %p1007_p12, %p1004_p11 }
 0x1c1   :  { %1012 = shalt.err (!%p1009_p13)
}
 0x1c2   :  { %s1031_s29 = smov 128   ;;  %s1032_s30 = smov 8  }
 0x1c3   :  { %771 = dma.vmem_to_hbm [thread:$0]  %s766_s2, 256, %s1114_s4, [#allocation6], %s1031_s29, %s1031_s29, %s1032_s30  }
 0x1c4   :  { %1021 = dma.done.wait [#allocation6], 256  }
 0x1c5   :  { %1022 = vsyncadd [#allocation6], 4294967040 }
 0x1c6   :  { %775 = vsyncpa [#allocation6], 1 }
 0x1c7   :  { %776 = vsyncmov [#allocation2] }
 0x1ca   :  { %s777_s7 = vpop.sfrf %776 }
 0x1cb   :  { %p863_p0 = scmp.ne.s32.totalorder %s777_s7, 0 }
 0x1cd   :  { %781 = shalt.err (%p863_p0)  }

</bundles_post_ra>
